<compile_context>
chip_gen: v7x
topology: tpu7x:2x2x1
jax: 0.10.0
libtpu: 0.0.40
codegen_flags: <defaults>
</compile_context>

<pallas_src>
import numpy as np
import jax
import jax.numpy as jnp
from jax.experimental import pallas as pl
from jax.experimental.pallas import tpu as pltpu

EPS = 1e-5


def _round_up(x, m):
    return ((x + m - 1) // m) * m


def conv_bn_relu(x_nchw, weight, gamma, beta, *, stride=1, padding=0):
    """ConvBnRelu forward. x_nchw: (N, Cin, H, W); weight: (Cout, Cin, KH, KW)."""
    N, Cin, H, W = x_nchw.shape
    Cout, _, KH, KW = weight.shape
    Hp, Wp = H + 2 * padding, W + 2 * padding
    Ho = (H + 2 * padding - KH) // stride + 1
    Wo = (W + 2 * padding - KW) // stride + 1

    L = Hp * Wp                                   # conv evaluated at every padded coord
    L_PAD = _round_up(L, 128)                     # lane-dense tile width per image
    max_off = (KH - 1) * Wp + (KW - 1)
    L_EXT = _round_up(L_PAD + max_off, 128)       # input columns per image (incl. shift halo)
    K = KH * KW * Cin
    offsets = [ky * Wp + kx for ky in range(KH) for kx in range(KW)]

    # ---- wrapper-side layout plumbing (no 9x patch blowup) ----
    xp = jnp.pad(x_nchw, ((0, 0), (0, 0), (padding, padding), (padding, padding)))
    xflat = xp.reshape(N, Cin, L)
    xflat = jnp.pad(xflat, ((0, 0), (0, 0), (0, L_EXT - L)))
    xt = jnp.transpose(xflat, (1, 0, 2)).reshape(Cin, N * L_EXT).astype(jnp.bfloat16)

    # Weight as (Cout, K), K ordered (ky, kx, ci) to match the in-kernel patch build.
    w2 = jnp.transpose(weight, (0, 2, 3, 1)).reshape(Cout, K).astype(jnp.bfloat16)

    # Validity mask over the L_PAD padded-coordinate columns (junk columns excluded
    # from the BN statistics; they are sliced away in the wrapper afterwards).
    cols = np.arange(L_PAD)
    hh, ww = cols // Wp, cols % Wp
    valid = ((cols < L) & (hh % stride == 0) & (ww % stride == 0)
             & (hh // stride < Ho) & (ww // stride < Wo))
    mask = jnp.asarray(valid.astype(np.float32)).reshape(1, L_PAD)

    cparams = pltpu.CompilerParams(dimension_semantics=("parallel",),
                                   vmem_limit_bytes=32 * 1024 * 1024)

    # ---------------- pass 1: conv (MXU) + per-image BN partial stats ----------------
    def pass1_kernel(xt_ref, w_ref, mask_ref, conv_ref, sum_ref, ssq_ref):
        # Build the transposed patch matrix (K, L_PAD) in VMEM from the resident input
        # tile: KH*KW static lane-offset slices, zero extra HBM traffic.
        patches = jnp.concatenate(
            [xt_ref[:, off:off + L_PAD] for off in offsets], axis=0)        # (K, L_PAD) bf16
        # Lane-dense conv: (Cout, K) @ (K, L_PAD) -> (Cout, L_PAD), f32 accumulation.
        acc = jnp.dot(w_ref[...], patches, preferred_element_type=jnp.float32)
        conv_ref[...] = acc
        masked = acc * mask_ref[...]                                        # zero junk cols
        sum_ref[0] = jnp.sum(masked, axis=1, keepdims=True)                 # (Cout, 1)
        ssq_ref[0] = jnp.sum(masked * masked, axis=1, keepdims=True)        # (Cout, 1)

    conv_flat, sums, ssqs = pl.pallas_call(
        pass1_kernel,
        out_shape=(jax.ShapeDtypeStruct((Cout, N * L_PAD), jnp.float32),
                   jax.ShapeDtypeStruct((N, Cout, 1), jnp.float32),
                   jax.ShapeDtypeStruct((N, Cout, 1), jnp.float32)),
        grid_spec=pl.GridSpec(
            grid=(N,),
            in_specs=[pl.BlockSpec((Cin, L_EXT), lambda b: (0, b)),
                      pl.BlockSpec((Cout, K), lambda b: (0, 0)),
                      pl.BlockSpec((1, L_PAD), lambda b: (0, 0))],
            out_specs=[pl.BlockSpec((Cout, L_PAD), lambda b: (0, b)),
                       pl.BlockSpec((1, Cout, 1), lambda b: (b, 0, 0)),
                       pl.BlockSpec((1, Cout, 1), lambda b: (b, 0, 0))],
        ),
        compiler_params=cparams,
    )(xt, w2, mask)

    # ---------------- global BN stats -> single per-channel FMA ----------------
    count = jnp.float32(N * Ho * Wo)
    s = jnp.sum(sums[:, :, 0], axis=0)                       # (Cout,)
    q = jnp.sum(ssqs[:, :, 0], axis=0)
    mean = s / count
    var = jnp.maximum(q / count - mean * mean, 0.0)          # biased variance, single pass
    scale_c = gamma.astype(jnp.float32) * jax.lax.rsqrt(var + EPS)
    shift_c = beta.astype(jnp.float32) - mean * scale_c
    scale = scale_c.reshape(Cout, 1)
    shift = shift_c.reshape(Cout, 1)

    # ---------------- pass 2: folded BN FMA + ReLU, lane-dense ----------------
    def pass2_kernel(conv_ref, scale_ref, shift_ref, out_ref):
        out_ref[...] = jnp.maximum(
            conv_ref[...] * scale_ref[...] + shift_ref[...], 0.0)

    y_flat = pl.pallas_call(
        pass2_kernel,
        out_shape=jax.ShapeDtypeStruct((Cout, N * L_PAD), jnp.float32),
        grid_spec=pl.GridSpec(
            grid=(N,),
            in_specs=[pl.BlockSpec((Cout, L_PAD), lambda b: (0, b)),
                      pl.BlockSpec((Cout, 1), lambda b: (0, 0)),
                      pl.BlockSpec((Cout, 1), lambda b: (0, 0))],
            out_specs=pl.BlockSpec((Cout, L_PAD), lambda b: (0, b)),
        ),
        compiler_params=cparams,
    )(conv_flat, scale, shift)

    # ---------------- strip padded / junk columns, back to NCHW ----------------
    y = y_flat.reshape(Cout, N, L_PAD)[:, :, :L].reshape(Cout, N, Hp, Wp)
    y = y[:, :, :(Ho - 1) * stride + 1:stride, :(Wo - 1) * stride + 1:stride]
    return jnp.transpose(y, (1, 0, 2, 3))                     # (N, Cout, Ho, Wo)


if __name__ == "__main__":
    key = jax.random.PRNGKey(0)
    k1, k2, k3, k4 = jax.random.split(key, 4)

    # ConvBnRelu(in_planes=4, out_planes=8, kernel_size=3, stride=1, padding=1)
    N, Cin, H, W = 2, 4, 16, 16
    Cout, KH, KW = 8, 3, 3
    stride, padding = 1, 1

    x = jax.random.normal(k1, (N, Cin, H, W), dtype=jnp.float32)
    weight = 0.1 * jax.random.normal(k2, (Cout, Cin, KH, KW), dtype=jnp.float32)
    gamma = 1.0 + 0.1 * jax.random.normal(k3, (Cout,), dtype=jnp.float32)
    beta = 0.1 * jax.random.normal(k4, (Cout,), dtype=jnp.float32)

    y = conv_bn_relu(x, weight, gamma, beta, stride=stride, padding=padding)
    y = jax.block_until_ready(y)
    assert y.shape == (N, Cout, H, W), y.shape

    def ref_forward(xf, wf):
        conv = jax.lax.conv_general_dilated(
            xf, wf, window_strides=(stride, stride),
            padding=[(padding, padding), (padding, padding)],
            dimension_numbers=("NCHW", "OIHW", "NCHW"),
            precision=jax.lax.Precision.HIGHEST)
        mean = conv.mean(axis=(0, 2, 3), keepdims=True)
        var = conv.var(axis=(0, 2, 3), keepdims=True)
        out = (conv - mean) * jax.lax.rsqrt(var + EPS)
        out = out * gamma.reshape(1, -1, 1, 1) + beta.reshape(1, -1, 1, 1)
        return jnp.maximum(out, 0.0)

    # Tight check: same bf16-rounded conv inputs as the kernel, f32 math everywhere else.
    ref_bf = ref_forward(x.astype(jnp.bfloat16).astype(jnp.float32),
                         weight.astype(jnp.bfloat16).astype(jnp.float32))
    assert jnp.allclose(y, ref_bf, atol=1e-3, rtol=1e-3), float(jnp.abs(y - ref_bf).max())

    # Loose check vs pure-f32 module semantics (deviation = bf16 input rounding only).
    ref_f32 = ref_forward(x, weight)
    assert jnp.allclose(y, ref_f32, atol=5e-2, rtol=5e-2), float(jnp.abs(y - ref_f32).max())

    print("KERNEL_OK")
</pallas_src>

<mosaic_0001>
module attributes {stable_mosaic.version = 11 : i64} {
  func.func @pass1_kernel(%arg0: i32, %arg1: memref<4x512xbf16, #tpu.memory_space<vmem>>, %arg2: memref<8x36xbf16, #tpu.memory_space<vmem>>, %arg3: memref<1x384xf32, #tpu.memory_space<vmem>>, %arg4: memref<8x384xf32, #tpu.memory_space<vmem>>, %arg5: memref<1x8x1xf32, #tpu.memory_space<vmem>>, %arg6: memref<1x8x1xf32, #tpu.memory_space<vmem>>) attributes {dimension_semantics = [#tpu.dimension_semantics<parallel>], iteration_bounds = array<i64: 2>, scalar_prefetch = 0 : i64, scratch_operands = 0 : i64, tpu.core_type = #tpu.core_type<tc>, window_params = [{transform_indices = @transform_0, window_bounds = array<i64: 4, 512>}, {pipeline_mode = #tpu.pipeline_mode<synchronous>, transform_indices = @transform_1, window_bounds = array<i64: 8, 36>}, {pipeline_mode = #tpu.pipeline_mode<synchronous>, transform_indices = @transform_2, window_bounds = array<i64: 1, 384>}, {transform_indices = @transform_3, window_bounds = array<i64: 8, 384>}, {transform_indices = @transform_4, window_bounds = array<i64: 1, 8, 1>}, {transform_indices = @transform_5, window_bounds = array<i64: 1, 8, 1>}]} {
    %c0 = arith.constant 0 : index
    %c0_0 = arith.constant 0 : index
    %0 = vector.load %arg1[%c0, %c0_0] : memref<4x512xbf16, #tpu.memory_space<vmem>>, vector<4x384xbf16>
    %c0_1 = arith.constant 0 : index
    %c1 = arith.constant 1 : index
    %1 = vector.load %arg1[%c0_1, %c1] : memref<4x512xbf16, #tpu.memory_space<vmem>>, vector<4x384xbf16>
    %c0_2 = arith.constant 0 : index
    %c2 = arith.constant 2 : index
    %2 = vector.load %arg1[%c0_2, %c2] : memref<4x512xbf16, #tpu.memory_space<vmem>>, vector<4x384xbf16>
    %c0_3 = arith.constant 0 : index
    %c18 = arith.constant 18 : index
    %3 = vector.load %arg1[%c0_3, %c18] : memref<4x512xbf16, #tpu.memory_space<vmem>>, vector<4x384xbf16>
    %c0_4 = arith.constant 0 : index
    %c19 = arith.constant 19 : index
    %4 = vector.load %arg1[%c0_4, %c19] : memref<4x512xbf16, #tpu.memory_space<vmem>>, vector<4x384xbf16>
    %c0_5 = arith.constant 0 : index
    %c20 = arith.constant 20 : index
    %5 = vector.load %arg1[%c0_5, %c20] : memref<4x512xbf16, #tpu.memory_space<vmem>>, vector<4x384xbf16>
    %c0_6 = arith.constant 0 : index
    %c36 = arith.constant 36 : index
    %6 = vector.load %arg1[%c0_6, %c36] : memref<4x512xbf16, #tpu.memory_space<vmem>>, vector<4x384xbf16>
    %c0_7 = arith.constant 0 : index
    %c37 = arith.constant 37 : index
    %7 = vector.load %arg1[%c0_7, %c37] : memref<4x512xbf16, #tpu.memory_space<vmem>>, vector<4x384xbf16>
    %c0_8 = arith.constant 0 : index
    %c38 = arith.constant 38 : index
    %8 = vector.load %arg1[%c0_8, %c38] : memref<4x512xbf16, #tpu.memory_space<vmem>>, vector<4x384xbf16>
    %9 = tpu.concatenate %0, %1, %2, %3, %4, %5, %6, %7, %8 in 0 : vector<4x384xbf16>, vector<4x384xbf16>, vector<4x384xbf16>, vector<4x384xbf16>, vector<4x384xbf16>, vector<4x384xbf16>, vector<4x384xbf16>, vector<4x384xbf16>, vector<4x384xbf16> -> vector<36x384xbf16>
    %c0_9 = arith.constant 0 : index
    %c0_10 = arith.constant 0 : index
    %10 = vector.load %arg2[%c0_9, %c0_10] : memref<8x36xbf16, #tpu.memory_space<vmem>>, vector<8x36xbf16>
    %cst = arith.constant dense<0.000000e+00> : vector<8x384xf32>
    %11 = tpu.matmul %10, %9, %cst {dimension_numbers = #tpu.dot_dimension_numbers<[1], [0], [0], [1], [0, 0, 1, 1], [], []>} : vector<8x36xbf16>, vector<36x384xbf16>, vector<8x384xf32> -> vector<8x384xf32>
    %c0_11 = arith.constant 0 : index
    %c0_12 = arith.constant 0 : index
    %12 = vector.load %arg4[%c0_11, %c0_12] : memref<8x384xf32, #tpu.memory_space<vmem>>, vector<8x384xf32>
    tpu.vector_store %arg4[%c0_11, %c0_12], %11 {strides = array<i32>} : memref<8x384xf32, #tpu.memory_space<vmem>>, vector<8x384xf32>,
    %c0_13 = arith.constant 0 : index
    %c0_14 = arith.constant 0 : index
    %13 = vector.load %arg3[%c0_13, %c0_14] : memref<1x384xf32, #tpu.memory_space<vmem>>, vector<1x384xf32>
    %14 = vector.broadcast %13 : vector<1x384xf32> to vector<8x384xf32>
    %15 = arith.mulf %11, %14 : vector<8x384xf32>
    %cst_15 = arith.constant dense<0.000000e+00> : vector<8xf32>
    %16 = vector.multi_reduction <add>, %15, %cst_15 [1] : vector<8x384xf32> to vector<8xf32>
    %17 = vector.shape_cast %16 : vector<8xf32> to vector<8x1xf32>
    %c0_16 = arith.constant 0 : index
    %c0_17 = arith.constant 0 : index
    %c0_18 = arith.constant 0 : index
    %18 = vector.load %arg5[%c0_16, %c0_17, %c0_18] : memref<1x8x1xf32, #tpu.memory_space<vmem>>, vector<1x8x1xf32>
    %19 = vector.shape_cast %18 : vector<1x8x1xf32> to vector<8x1xf32>
    %20 = vector.shape_cast %17 : vector<8x1xf32> to vector<1x8x1xf32>
    tpu.vector_store %arg5[%c0_16, %c0_17, %c0_18], %20 {strides = array<i32>} : memref<1x8x1xf32, #tpu.memory_space<vmem>>, vector<1x8x1xf32>,
    %21 = arith.mulf %15, %15 : vector<8x384xf32>
    %cst_19 = arith.constant dense<0.000000e+00> : vector<8xf32>
    %22 = vector.multi_reduction <add>, %21, %cst_19 [1] : vector<8x384xf32> to vector<8xf32>
    %23 = vector.shape_cast %22 : vector<8xf32> to vector<8x1xf32>
    %c0_20 = arith.constant 0 : index
    %c0_21 = arith.constant 0 : index
    %c0_22 = arith.constant 0 : index
    %24 = vector.load %arg6[%c0_20, %c0_21, %c0_22] : memref<1x8x1xf32, #tpu.memory_space<vmem>>, vector<1x8x1xf32>
    %25 = vector.shape_cast %24 : vector<1x8x1xf32> to vector<8x1xf32>
    %26 = vector.shape_cast %23 : vector<8x1xf32> to vector<1x8x1xf32>
    tpu.vector_store %arg6[%c0_20, %c0_21, %c0_22], %26 {strides = array<i32>} : memref<1x8x1xf32, #tpu.memory_space<vmem>>, vector<1x8x1xf32>,
    return
  }
  func.func @transform_0(%arg0: i32) -> (i32, i32) {
    %c0_i32 = arith.constant 0 : i32
    %c0_i32_0 = arith.constant 0 : i32
    return %c0_i32, %arg0 : i32, i32
  }
  func.func @transform_1(%arg0: i32) -> (i32, i32) {
    %c0_i32 = arith.constant 0 : i32
    %c0_i32_0 = arith.constant 0 : i32
    %c0_i32_1 = arith.constant 0 : i32
    return %c0_i32, %c0_i32_0 : i32, i32
  }
  func.func @transform_2(%arg0: i32) -> (i32, i32) {
    %c0_i32 = arith.constant 0 : i32
    %c0_i32_0 = arith.constant 0 : i32
    %c0_i32_1 = arith.constant 0 : i32
    return %c0_i32, %c0_i32_0 : i32, i32
  }
  func.func @transform_3(%arg0: i32) -> (i32, i32) {
    %c0_i32 = arith.constant 0 : i32
    %c0_i32_0 = arith.constant 0 : i32
    return %c0_i32, %arg0 : i32, i32
  }
  func.func @transform_4(%arg0: i32) -> (i32, i32, i32) {
    %c0_i32 = arith.constant 0 : i32
    %c0_i32_0 = arith.constant 0 : i32
    %c0_i32_1 = arith.constant 0 : i32
    return %arg0, %c0_i32, %c0_i32_0 : i32, i32, i32
  }
  func.func @transform_5(%arg0: i32) -> (i32, i32, i32) {
    %c0_i32 = arith.constant 0 : i32
    %c0_i32_0 = arith.constant 0 : i32
    %c0_i32_1 = arith.constant 0 : i32
    return %arg0, %c0_i32, %c0_i32_0 : i32, i32, i32
  }
}

</mosaic_0001>

<bundles_post_ra>
// kernel: tpu_custom_call.1
= control target key start
LH: loop header
LB: loop body
LE: loop exit
PB: predicated region body
PF: predicated region fallthrough
CT: control target
= control target key end

     0   :  { %11 = vsyncpa [#allocation3], 0  ;;  %s1318_s0 = inlined_call_operand.hbm [shape: bf16[4,1024], index: 0, kind: input, shape index: {}]   ;;  %s1319_s1 = inlined_call_operand.hbm [shape: bf16[8,36], index: 1, kind: input, shape index: {}]   ;;  %s1320_s2 = inlined_call_operand.vmem [shape: f32[1,384], index: 2, kind: input, shape index: {}]   ;;  %s1321_s3 = inlined_call_operand.hbm [shape: f32[8,768], index: 3, kind: output, shape index: {0}]   ;;  %s1322_s4 = inlined_call_operand.vmem [shape: f32[2,8,1], index: 4, kind: output, shape index: {1}]   ;;  %s1323_s5 = inlined_call_operand.vmem [shape: f32[2,8,1], index: 5, kind: output, shape index: {2}]  }
   0x1   :  { %13 = vsyncpa [#allocation3 + $0x1], 0 }
   0x2   :  { %14 = vsyncpa [#allocation6], 0 }
   0x3   :  { %15 = vsyncpa [#allocation4], 0 }
   0x4   :  { %17 = vsyncpa [#allocation4 + $0x1], 0  ;;  %s1045_s18 = smov 0   ;;  %s1047_s19 = smov 0  }
   0x5   :  { %s1049_s20 = smov 0   ;;  %s1051_s21 = smov 0  }
   0x6 LB: > { %s1066_s22 = sadd.s32 4294967295, %s998_s21   ;;  %s763_s23 = sadd.s32 4294967294, %s998_s21   ;;  %s998_s21 = sphi %s1051_s21, %s1347_s21   ;;  %s994_s20 = sphi %s1049_s20, %s1346_s20   ;;  %s990_s19 = sphi %s1047_s19, %s1345_s19   ;;  %s986_s18 = sphi %s1045_s18, %s1344_s18  }
   0x7   : > { %p43_p0 = scmp.ne.s32.totalorder %s990_s19, %s986_s18  ;;  %p1324_p1 = scmp.eq.s32.totalorder %s1066_s22, 0 }
   0x8   : > { %p115_p3 = scmp.eq.s32.totalorder %s763_s23, 1  ;;  %p764_p5 = scmp.ge.s32.totalorder %s998_s21, 1 }
   0x9   : > { %p1075_p4 = por %p1324_p1, %p43_p0  ;;  %p174_p7 = scmp.lt.s32.totalorder %s998_s21, 3 }
   0xa   : > { %p1080_p6 = por %p115_p3, %p43_p0  ;;  %s1000_s27 = smov [#allocation5]  }
   0xb   : > { %s1327_s24 = scalar_select %p1075_p4, 1, 0 }
   0xc   : > { %s1328_s25 = scalar_select %p1080_p6, 1, 0 }
   0xd   : > { %p1085_p8 = pnand %p764_p5, %p174_p7  ;;  %s187_s28 = sshll.u32 %s1000_s27, 4  ;;  %s188_s28 = int_to_ptr.vmem [resolvable:$true] %s187_s28 }
   0xe   : > { %s1093_s29 = sadd.s32 1, %s998_s21   ;;  %s30_s8 = sadd.s32 1, %s994_s20 }
   0xf   : > { %s1329_s26 = scalar_select %p1085_p8, 1, 0 }
  0x10   : > { %p806_p10 = pneg %p1085_p8  ;;  %s27_s6 = ssub.s32 %s998_s21, %s1093_s29 }
  0x11   : > { %p1103_p12 = scmp.eq.s32.totalorder %s27_s6, 0  ;;  %s870_s11 = scalar_lea.hbm %s1319_s1, 64 }
  0x12   : > { %p1097_p11 = pnand %p806_p10, %p1324_p1  ;;  %p871_p0 = scmp.ne.s32.totalorder %s1319_s1, %s870_s11 }
  0x13   : > { %s1331_s7 = scalar_select %p1103_p12, 1, 0 }
  0x14   : > { %p872_p3 = pneg %p1097_p11  ;;  %p877_p10 = scmp.lt.u32.totalorder %s870_s11, %s1319_s1 }
  0x16   : > { %p873_p5 = pnand %p872_p3, %p871_p0 }
  0x18   : > { %p874_p7 = pneg %p873_p5 }
  0x1a   : > { %p879_p9 = pnand %p877_p10, %p874_p7 }
  0x1c   : > { %882 = shalt.err (!%p879_p9)
}
  0x1d   : > { %s883_s16 = scalar_lea.vmem %s188_s28, 64  ;;  %p891_p6 = scmp.lt.s32.totalorder %s188_s28, %s188_s28 }
  0x1e   : > { %p884_p1 = scmp.ne.s32.totalorder %s188_s28, %s883_s16  ;;  %p892_p4 = scmp.lt.s32.totalorder %s883_s16, %s883_s16 }
  0x20   : > { %p886_p2 = pnand %p884_p1, %p872_p3  ;;  %p893_p8 = por %p892_p4, %p891_p6 }
  0x22   : > { %p887_p13 = pneg %p886_p2 }
  0x24   : > { %p894_p12 = pnand %p893_p8, %p887_p13 }
  0x26   : > { %897 = shalt.err (!%p894_p12)
}
  0x27   : > { %809 = dma.hbm_to_vmem [thread:$0]  (!%p1097_p11), %s1319_s1, 64, %s188_s28, [#allocation6]  }
  0x28   : > { %p1332_p1 = scmp.ne.s32.totalorder %s1331_s7, 0  ;;  %p38_p2 = scmp.eq.s32.totalorder %s998_s21, 0 }
  0x29   : > { %p1333_p4 = scmp.ne.s32.totalorder %s994_s20, %s990_s19  ;;  %p1334_p6 = scmp.eq.s32.totalorder %s1066_s22, 1 }
  0x2a   : > { %s1129_s27 = scalar_select %p1332_p1, %s994_s20, %s30_s8  }
  0x2b   : > { %p1137_p8 = por %p1334_p6, %p1333_p4  ;;  %p819_p9 = scmp.lt.s32.totalorder %s998_s21, 2 }
  0x2c   : > { %s201_s6 = sand.u32 1, %s994_s20   ;;  %p1336_p12 = pmov %p1333_p4 }
  0x2d   : > { %s767_s9 = sshll.u32 %s201_s6, 3  ;;  %s781_s10 = sshll.u32 %s998_s21, 7 }
  0x2e   : > { %p39_p13 = por %p38_p2, %p1336_p12  ;;  %s1150_s28 = scalar_lea.hbm %s1318_s0, %s781_s10 }
  0x2f   : > { %s205_s7 = scalar_lea.vmem [#allocation2], %s767_s9  ;;  %s202_s14 = scalar_lea.sflag [#allocation3], %s201_s6 }
  0x30   : > { %s213_s8 = sshll.u32 %s205_s7, 4  ;;  %p1152_p11 = pnand %p819_p9, %p39_p13  ;;  %s1156_s8 = int_to_ptr.vmem [resolvable:$true] %s213_s8 }
  0x31   : > { %s898_s15 = scalar_lea.hbm %s1150_s28, 128  ;;  %s903_s23 = scalar_lea.hbm %s1318_s0, 256 }
  0x32   : > { %p899_p0 = scmp.ne.s32.totalorder %s1150_s28, %s898_s15  ;;  %p900_p3 = pneg %p1152_p11 }
  0x33   : > { %p904_p10 = scmp.lt.u32.totalorder %s1150_s28, %s1318_s0  ;;  %p905_p1 = scmp.lt.u32.totalorder %s903_s23, %s898_s15 }
  0x34   : > { %p901_p5 = pnand %p900_p3, %p899_p0  ;;  %p907_p4 = scmp.lt.u32.totalorder %s898_s15, %s1150_s28 }
  0x35   : > { %p906_p2 = por %p905_p1, %p904_p10 }
  0x36   : > { %p902_p7 = pneg %p901_p5 }
  0x37   : > { %p908_p6 = por %p907_p4, %p906_p2 }
  0x39   : > { %p909_p9 = pnand %p908_p6, %p902_p7 }
  0x3b   : > { %912 = shalt.err (!%p909_p9)
}
  0x3c   : > { %s913_s6 = scalar_lea.vmem %s1156_s8, 128  ;;  %s1001_s11 = smov [#allocation2]  }
  0x3d   : > { %p914_p12 = scmp.ne.s32.totalorder %s1156_s8, %s913_s6  ;;  %s918_s12 = sshll.u32 %s1001_s11, 4  ;;  %s919_s12 = int_to_ptr.vmem [resolvable:$false] %s918_s12 }
  0x3e   : > { %s920_s7 = scalar_lea.vmem %s919_s12, 256  ;;  %p921_p5 = scmp.lt.s32.totalorder %s1156_s8, %s919_s12 }
  0x3f   : > { %p916_p13 = pnand %p914_p12, %p900_p3  ;;  %p922_p10 = scmp.lt.s32.totalorder %s920_s7, %s913_s6 }
  0x41   : > { %p917_p0 = pneg %p916_p13  ;;  %p923_p1 = por %p922_p10, %p921_p5 }
  0x43   : > { %p924_p2 = pnand %p923_p1, %p917_p0 }
  0x45   : > { %927 = shalt.err (!%p924_p2)
}
  0x46   : > { %813 = dma.hbm_to_vmem [thread:$0]  (!%p1152_p11), %s1150_s28, 128, %s1156_s8, %s202_s14  }
  0x47   : > { %p1338_p7 = scmp.ne.s32.totalorder %s1329_s26, 0 }
  0x48   : > { %s1186_s15 = sand.u32 (!%p1338_p7), 1, %s990_s19   ;;  %p1339_p3 = scmp.ne.s32.totalorder (!%p1338_p7), %s1327_s24, 0 }
  0x49   : > { %222 = sbr.rel (%p1338_p7) target bundleno = 637 (0x27d), region = 32  ;;  %s771_s16 = sshll.u32 (!%p1338_p7), %s1186_s15, 3 }
  0x4a   : > { %s225_s17 = scalar_lea.sflag (!%p1338_p7), [#allocation3], %s1186_s15  ;;  %s1190_s23 = scalar_lea.vmem (!%p1338_p7), [#allocation2], %s771_s16 }
  0x50   : > { %973 = dma.done.wait (%p1339_p3), %s225_s17, 128  }
  0x51   : > { %975 = vsyncadd (%p1339_p3), %s225_s17, 4294967168  ;;  %p1340_p11 = scmp.eq.s32.totalorder %s1066_s22, 0 }
  0x53   : > { %977 = dma.done.wait (%p1340_p11), [#allocation6], 64   ;;  %p1341_p4 = pmov %p1340_p11 }
  0x54   : > { %v285_v0 = vlaneseq  ;;  %v1002_v1 = vmov 1983009808   ;;  %v279_v6 = vld [vmem:[%s1190_s23] sm:$0xff]  ;;  %s1003_s24 = smov 126   ;;  %s1004_s26 = smov 127   ;;  %v1008_v17 = vmov 0.0  }
  0x55   : > { %979 = vsyncadd (%p1341_p4), [#allocation6], 4294967232  ;;  %v283_v2 = vunpack.c.l.s4 %v1002_v1  ;;  %v298_v8 = vcombine.low %v279_v6, %v279_v6  ;;  %v327_v10 = vcombine.high %v279_v6, %v279_v6  ;;  %s1005_s28 = smov 110   ;;  %s1006_s8 = smov 109   ;;  %787 = vmatprep.subr.bf16.mxu1 %v1008_v17  ;;  %v1011_v19 = vmov 0  }
  0x56   : > { %v1200_v3 = vshrl.u32 %v285_v0, 7  ;;  %s1007_s13 = smov 108   ;;  %s1009_s14 = smov 92   ;;  %520 = vmatprep.mubr.bf16.mxu0 %v1011_v19  ;;  %vm1012_vm0 = vmmov 0   ;;  %v278_v22 = vld [vmem:[%s1190_s23] sm:$0x3f] }
  0x57   : > { %v284_v4 = vunpack.c.0.s8 %v283_v2  ;;  %s1010_s9 = smov 91   ;;  %793 = vmatprep.mubr.msk.bf16.mxu1 %vm1012_vm0, %v1008_v17  ;;  %s1013_s10 = smov 90   ;;  %vm323_vm1 = vcmask 1039360   ;;  %vm423_vm2 = vcmask 1041408   ;;  %vm358_vm3 = vcmask 900096  }
  0x58   : > { %vm345_vm4 = vcmask 1031168   ;;  %vm440_vm5 = vcmask 1045504   ;;  %vm433_vm6 = vcmask 1043456   ;;  %v281_v49 = vcombine.high %v278_v22, %v278_v22  ;;  %s797_s6 = smul.u32 24, %s1186_s15 }
  0x59   : > { %v1203_v5 = vsub.s32 %v284_v4, %v1200_v3  ;;  %vm383_vm7 = vcmask 883712   ;;  %vm395_vm8 = vcmask 752640   ;;  %vm371_vm9 = vcmask 891904   ;;  %s782_s17 = smul.u32 384, %s1066_s22 }
  0x5a   : > { %vm407_vm10 = vcmask 744448   ;;  %vm419_vm11 = vcmask 736256   ;;  %vm475_vm12 = vcmask 293888   ;;  %s254_s7 = scalar_lea.vmem [#allocation7], %s797_s6 }
  0x5b   : > { %v312_v7 = vrot.slane %v279_v6, %v1203_v5  ;;  %v305_v9 = vrot.slane %v298_v8, %v1203_v5  ;;  %v334_v13 = vrot.slane %v327_v10, %v1203_v5  ;;  %v288_v25 = vrot.slane %v278_v22, %v1203_v5  ;;  %s629_s16 = sshll.u32 %s254_s7, 4  ;;  %s1269_s16 = int_to_ptr.vmem [resolvable:$true] %s629_s16 }
  0x5c   : > { %v295_v52 = vrot.slane %v281_v49, %v1203_v5 }
  0x5d   : > { %339 = vrot.lane.b32.xlu1 %v312_v7, %s1003_s24  ;;  %319 = vrot.lane.b32.xlu0 %v312_v7, %s1004_s26  ;;  %v335_v11 = vcombine.low %v312_v7, %v312_v7  ;;  %v313_v12 = vcombine.high %v305_v9, %v305_v9  ;;  %v336_v14 = vcombine.low %v334_v13, %v334_v13 }
  0x5e   : > { %v314_v15 = vcombine.high %v312_v7, %v312_v7  ;;  %v349_v16 = vcombine.low %v305_v9, %v305_v9  ;;  %v362_v18 = vcombine.high %v334_v13, %v334_v13  ;;  %v296_v28 = vcombine.high %v288_v25, %v288_v25 }
  0x61   : > { %352 = vrot.lane.b32.xlu0 %v305_v9, %s1005_s28  ;;  %315 = vrot.lane.b32.xlu1 %v305_v9, %s1004_s26 }
  0x65   : > { %337 = vrot.lane.b32.xlu1 %v335_v11, %s1003_s24  ;;  %317 = vrot.lane.b32.xlu0 %v313_v12, %s1004_s26 }
  0x69   : > { %354 = vrot.lane.b32.xlu1 %v335_v11, %s1005_s28  ;;  %341 = vrot.lane.b32.xlu0 %v336_v14, %s1003_s24 }
  0x6d   : > { %321 = vrot.lane.b32.xlu1 %v314_v15, %s1004_s26  ;;  %350 = vrot.lane.b32.xlu0 %v349_v16, %s1005_s28  ;;  %s627_s26 = scalar_lea.hbm %s1321_s3, %s782_s17 }
  0x71   : > { %367 = vrot.lane.b32.xlu1 %v334_v13, %s1006_s8  ;;  %365 = vrot.lane.b32.xlu0 %v314_v15, %s1006_s8 }
  0x75   : > { %379 = vrot.lane.b32.xlu1 %v312_v7, %s1007_s13  ;;  %377 = vrot.lane.b32.xlu0 %v313_v12, %s1007_s13 }
  0x79   : > { %363 = vrot.lane.b32.xlu1 %v312_v7, %s1006_s8  ;;  %343 = vrot.lane.b32.xlu0 %v334_v13, %s1003_s24 }
  0x7d   : > { %389 = vrot.lane.b32.xlu1 %v312_v7, %s1009_s14  ;;  %375 = vrot.lane.b32.xlu0 %v305_v9, %s1007_s13 }
  0x81   : > { %356 = vrot.lane.b32.xlu1 %v312_v7, %s1005_s28  ;;  %391 = vrot.lane.b32.xlu0 %v336_v14, %s1009_s14  ;;  %s607_s28 = scalar_lea.sflag [#allocation4], %s1186_s15 }
  0x85   : > { %401 = vrot.lane.b32.xlu1 %v305_v9, %s1010_s9  ;;  %387 = vrot.lane.b32.xlu0 %v335_v11, %s1009_s14 }
  0x89   : > { %399 = vrot.lane.b32.xlu1 %v349_v16, %s1010_s9  ;;  %403 = vrot.lane.b32.xlu0 %v335_v11, %s1010_s9 }
  0x8d   : > { %381 = vrot.lane.b32.xlu1 %v314_v15, %s1007_s13  ;;  %369 = vrot.lane.b32.xlu0 %v362_v18, %s1006_s8  ;;  %s928_s8 = scalar_lea.vmem %s1269_s16, 384  ;;  %s1014_s13 = smov [#allocation7]  }
  0x8e   : > { %p929_p6 = scmp.ne.s32.totalorder %s1269_s16, %s928_s8 }
  0x90   : > { %p930_p9 = pnand %p929_p6, %p1137_p8 }
  0x91   : > { %405 = vrot.lane.b32.xlu1 %v312_v7, %s1010_s9  ;;  %393 = vrot.lane.b32.xlu0 %v334_v13, %s1009_s14  ;;  %s932_s14 = sshll.u32 %s1014_s13, 4  ;;  %s933_s14 = int_to_ptr.vmem [resolvable:$false] %s932_s14 }
  0x92   : > { %p931_p12 = pneg %p930_p9  ;;  %s934_s9 = scalar_lea.vmem %s933_s14, 768 }
  0x93   : > { %p935_p13 = scmp.lt.s32.totalorder %s1269_s16, %s933_s14  ;;  %p936_p0 = scmp.lt.s32.totalorder %s934_s9, %s928_s8 }
  0x95   : > { %413 = vrot.lane.b32.xlu1 %v314_v15, %s1013_s10  ;;  %411 = vrot.lane.b32.xlu0 %v312_v7, %s1013_s10  ;;  %p937_p5 = por %p936_p0, %p935_p13 }
  0x97   : > { %p938_p10 = pnand %p937_p5, %p931_p12 }
  0x99   : > { %417 = vrot.lane.b32.xlu1 %v362_v18, %s1013_s10  ;;  %415 = vrot.lane.b32.xlu0 %v334_v13, %s1013_s10 }
  0xcf   : > { %v340_v20 = vpop.permute.xlu1 %339  ;;  %v320_v21 = vpop.permute.xlu0 %319 }
  0xd3   : > { %v353_v23 = vpop.permute.xlu0 %352  ;;  %v316_v24 = vpop.permute.xlu1 %315 }
  0xd7   : > { %v338_v26 = vpop.permute.xlu1 %337  ;;  %v318_v27 = vpop.permute.xlu0 %317 }
  0xd8   : > { %v325_v29 = vsel %vm323_vm1, %v318_v27, %v320_v21  ;;  %v324_v30 = vsel %vm323_vm1, %v316_v24, %v318_v27  ;;  %v346_v36 = vsel %vm345_vm4, %v338_v26, %v340_v20 }
  0xd9   : > { %v429_v33 = vsel %vm423_vm2, %v296_v28, %v325_v29  ;;  %v426_v37 = vsel %vm423_vm2, %v288_v25, %v324_v30 }
  0xda   : > { %v435_v43 = vsel %vm433_vm6, %v426_v37, %v346_v36 }
  0xdb   : > { %v355_v31 = vpop.permute.xlu1 %354  ;;  %v342_v32 = vpop.permute.xlu0 %341 }
  0xdc   : > { %v360_v34 = vsel %vm358_vm3, %v353_v23, %v355_v31  ;;  %v347_v35 = vsel %vm345_vm4, %v340_v20, %v342_v32 }
  0xdd   : > { %v437_v38 = vsel %vm433_vm6, %v429_v33, %v347_v35 }
  0xde   : > { %v445_v39 = vsel %vm440_vm5, %v437_v38, %v360_v34 }
  0xdf   : > { %v322_v40 = vpop.permute.xlu1 %321  ;;  %v351_v41 = vpop.permute.xlu0 %350  ;;  %488 = vmatprep.subr.bf16.mxu0 %v445_v39  ;;  %v474_v39 = vld [vmem:[#allocation5] sm:$0xf] }
  0xe0   : > { %v359_v42 = vsel %vm358_vm3, %v351_v41, %v353_v23  ;;  %v326_v55 = vsel %vm323_vm1, %v320_v21, %v322_v40  ;;  %v584_v40 = vsub.s32 2, %v1200_v3  ;;  %v572_v41 = vld [vmem:[%s1320_s2] sm:$0x7] }
  0xe1   : > { %v442_v44 = vsel %vm440_vm5, %v435_v43, %v359_v42  ;;  %v432_v57 = vsel %vm423_vm2, %v295_v52, %v326_v55  ;;  %v580_v42 = vsub.s32 1, %v1200_v3 }
  0xe2   : > { %489 = vmatpush1.bf16.msra.mxu0 %v442_v44  ;;  %v585_v44 = vrot.slane %v572_v41, %v584_v40 }
  0xe3   : > { %v368_v45 = vpop.permute.xlu1 %367  ;;  %v366_v46 = vpop.permute.xlu0 %365 }
  0xe4   : > { %v373_v6 = vsel %vm371_vm9, %v366_v46, %v368_v45 }
  0xe7   : > { %v380_v47 = vpop.permute.xlu1 %379  ;;  %v378_v48 = vpop.permute.xlu0 %377 }
  0xe8   : > { %v385_v1 = vsel %vm383_vm7, %v378_v48, %v380_v47 }
  0xe9   : > { %v455_v8 = vsel %vm423_vm2, %v373_v6, %v385_v1 }
  0xeb   : > { %v364_v50 = vpop.permute.xlu1 %363  ;;  %v344_v51 = vpop.permute.xlu0 %343 }
  0xec   : > { %v348_v56 = vsel %vm345_vm4, %v342_v32, %v344_v51  ;;  %v372_v7 = vsel %vm371_vm9, %v364_v50, %v366_v46 }
  0xed   : > { %v439_v61 = vsel %vm433_vm6, %v432_v57, %v348_v56 }
  0xef   : > { %v390_v53 = vpop.permute.xlu1 %389  ;;  %v376_v54 = vpop.permute.xlu0 %375 }
  0xf0   : > { %v384_v2 = vsel %vm383_vm7, %v376_v54, %v378_v48 }
  0xf1   : > { %v452_v9 = vsel %vm423_vm2, %v372_v7, %v384_v2 }
  0xf3   : > { %v357_v58 = vpop.permute.xlu1 %356  ;;  %v392_v59 = vpop.permute.xlu0 %391 }
  0xf4   : > { %v361_v60 = vsel %vm358_vm3, %v355_v31, %v357_v58  ;;  %v397_v4 = vsel %vm395_vm8, %v390_v53, %v392_v59 }
  0xf5   : > { %v448_v62 = vsel %vm440_vm5, %v439_v61, %v361_v60  ;;  %v462_v14 = vsel %vm433_vm6, %v455_v8, %v397_v4 }
  0xf6   : > { %788 = vmatpush3.bf16.msra.mxu1 %v448_v62 }
  0xf7   : > { %v402_v63 = vpop.permute.xlu1 %401  ;;  %v388_v0 = vpop.permute.xlu0 %387  ;;  %789 = vmatprep.subr.bf16.mxu1 %v1008_v17 }
  0xf8   : > { %v396_v5 = vsel %vm395_vm8, %v388_v0, %v390_v53 }
  0xf9   : > { %v460_v15 = vsel %vm433_vm6, %v452_v9, %v396_v5 }
  0xfb   : > { %v400_v10 = vpop.permute.xlu1 %399  ;;  %v404_v11 = vpop.permute.xlu0 %403 }
  0xfc   : > { %v408_v12 = vsel %vm407_vm10, %v400_v10, %v402_v63  ;;  %v409_v13 = vsel %vm407_vm10, %v402_v63, %v404_v11 }
  0xfd   : > { %v469_v16 = vsel %vm440_vm5, %v462_v14, %v409_v13  ;;  %v466_v18 = vsel %vm440_vm5, %v460_v15, %v408_v12 }
  0xfe   : > { %490 = vmatprep.subr.bf16.mxu0 %v469_v16 }
  0xff   : > { %v382_v19 = vpop.permute.xlu1 %381  ;;  %v370_v20 = vpop.permute.xlu0 %369  ;;  %491 = vmatpush1.bf16.msra.mxu0 %v466_v18 }
 0x100   : > { %v386_v21 = vsel %vm383_vm7, %v380_v47, %v382_v19  ;;  %v374_v22 = vsel %vm371_vm9, %v368_v45, %v370_v20  ;;  %v581_v45 = vrot.slane %v572_v41, %v580_v42 }
 0x101   : > { %v458_v25 = vsel %vm423_vm2, %v374_v22, %v386_v21 }
 0x103   : > { %v406_v23 = vpop.permute.xlu1 %405  ;;  %v394_v24 = vpop.permute.xlu0 %393 }
 0x104   : > { %v410_v26 = vsel %vm407_vm10, %v404_v11, %v406_v23  ;;  %v398_v27 = vsel %vm395_vm8, %v392_v59, %v394_v24 }
 0x105   : > { %v464_v28 = vsel %vm433_vm6, %v458_v25, %v398_v27 }
 0x106   : > { %v472_v29 = vsel %vm440_vm5, %v464_v28, %v410_v26 }
 0x107   : > { %v414_v30 = vpop.permute.xlu1 %413  ;;  %v412_v31 = vpop.permute.xlu0 %411  ;;  %790 = vmatpush3.bf16.msra.mxu1 %v472_v29 }
 0x108   : > { %791 = vmatprep.subr.bf16.mxu1 %v1008_v17  ;;  %v420_v32 = vsel %vm419_vm11, %v412_v31, %v414_v30  ;;  %v576_v17 = vsub.s32 0, %v1200_v3 }
 0x109   : > { %v480_v37 = vsel %vm423_vm2, %v420_v32, 0 }
 0x10a   : > { %v577_v43 = vrot.slane %v572_v41, %v576_v17 }
 0x10b   : > { %v418_v33 = vpop.permute.xlu1 %417  ;;  %v416_v34 = vpop.permute.xlu0 %415 }
 0x10c   : > { %v421_v35 = vsel %vm419_vm11, %v414_v30, %v416_v34  ;;  %v422_v36 = vsel %vm419_vm11, %v416_v34, %v418_v33 }
 0x10d   : > { %775 = vmatprep.subr.msk.bf16.mxu0 %vm423_vm2, %v421_v35  ;;  %v486_v38 = vsel %vm423_vm2, %v422_v36, 0 }
 0x10e   : > { %493 = vmatpush1.bf16.msra.mxu0 %v480_v37  ;;  %792 = vmatpush3.bf16.msra.mxu1 %v486_v38 }
 0x111   : > { %776 = vmatmul.mubr.msk.bf16.vlgmr.msra.gmra.mrb[0].mxu0 %vm475_vm12, %v474_v39  ;;  %794 = vmatmul.mubr.msk.bf16.vlgmr.msra.gmra.mrb[0].mxu1 %vm475_vm12, %v474_v39 }
 0x1e4   : > { %v522_v46 = vpop.f32.mrb[0].mxu0  ;;  %v563_v47 = vpop.f32.mrb[0].mxu1 }
 0x1e5   : > { %569 = vst [vmem:[%s254_s7] sm:$0xff] %v522_v46  ;;  %v589_v48 = vmul.f32 %v577_v43, %v522_v46  ;;  %571 = vst [vmem:[%s254_s7 + $0x10] sm:$0xff] %v563_v47  ;;  %v591_v49 = vmul.f32 %v585_v44, %v563_v47  ;;  %v524_v50 = vpop.f32.mrb[1].mxu0  ;;  %v795_v51 = vpop.f32.mrb[1].mxu1 }
 0x1e6   : > { %570 = vst [vmem:[%s254_s7 + $0x8] sm:$0xff] %v524_v50  ;;  %v590_v52 = vmul.f32 %v581_v45, %v524_v50  ;;  %v526_v53 = vpop.f32.mrb[2].mxu0  ;;  %v566_v54 = vpop.f32.mrb[2].mxu1 }
 0x1e7   : > { %v598_v55 = vmul.f32 %v589_v48, %v589_v48  ;;  %v527_v3 = vpop.f32.mrb[3].mxu0  ;;  %v796_v56 = vpop.f32.mrb[3].mxu1  ;;  %v600_v59 = vmul.f32 %v591_v49, %v591_v49 }
 0x1e8   : > { %v599_v57 = vmul.f32 %v590_v52, %v590_v52  ;;  %v592_v58 = vadd.f32 %v590_v52, %v589_v48 }
 0x1ea   : > { %v593_v60 = vadd.f32 %v592_v58, %v591_v49  ;;  %v601_v61 = vadd.f32 %v599_v57, %v598_v55 }
 0x1ec   : > { %594 = vadd.xlane.f32.xlu0 %v593_v60  ;;  %v602_v62 = vadd.f32 %v601_v61, %v600_v59 }
 0x1ee   : > { %603 = vadd.xlane.f32.xlu1 %v602_v62 }
 0x1ef   : > { %941 = shalt.err (!%p938_p10)
}
 0x1f0   : > { %s942_s10 = scalar_lea.hbm %s627_s26, 384  ;;  %s946_s11 = scalar_lea.hbm %s1321_s3, 768 }
 0x1f1   : > { %p943_p1 = scmp.ne.s32.totalorder %s627_s26, %s942_s10  ;;  %p947_p3 = scmp.lt.u32.totalorder %s627_s26, %s1321_s3 }
 0x1f2   : > { %p948_p11 = scmp.lt.u32.totalorder %s946_s11, %s942_s10  ;;  %p950_p6 = scmp.lt.u32.totalorder %s942_s10, %s627_s26 }
 0x1f3   : > { %p944_p2 = pnand %p943_p1, %p1137_p8 }
 0x1f4   : > { %p949_p4 = por %p948_p11, %p947_p3 }
 0x1f5   : > { %p945_p7 = pneg %p944_p2 }
 0x1f6   : > { %p951_p9 = por %p950_p6, %p949_p4 }
 0x1f8   : > { %p952_p12 = pnand %p951_p9, %p945_p7 }
 0x1fa   : > { %955 = shalt.err (!%p952_p12)
}
 0x1fb   : > { %804 = dma.vmem_to_hbm [thread:$0]  (%p1137_p8), %s1269_s16, 384, %s627_s26, %s607_s28   ;;  %vm596_vm13 = vcmask 7168  }
 0x1fc   : > { %p269_p13 = scmp.lt.s32.totalorder %s1066_s22, 1 }
 0x1fe   : > { %s1349_s22 = smov (!%p269_p13, %s1066_s22), 1 }
 0x1ff   : > { %s773_s17 = sshll.u32 %s1349_s22, 3 }
 0x200   : > { %s272_s8 = scalar_lea.vmem %s1322_s4, %s773_s17  ;;  %s276_s9 = scalar_lea.vmem %s1323_s5, %s773_s17 }
 0x279   : > { %v595_v63 = vpop.xlane.xlu0 %594 }
 0x27a   : > { %597 = vst.msk [vmem:[%s272_s8] sm:$0xff] %vm596_vm13, %v595_v63 }
 0x27b   : > { %v604_v0 = vpop.xlane.xlu1 %603 }
 0x27c   : > { %605 = vst.msk [vmem:[%s276_s9] sm:$0xff] %vm596_vm13, %v604_v0 }
 0x27d PF: > { %s647_s30 = sand.u32 1, %s986_s18   ;;  %p1342_p8 = scmp.ne.s32.totalorder %s1328_s25, 0 }
 0x27e   : > { %p1343_p0 = scmp.ge.s32.totalorder %s998_s21, 2  ;;  %s648_s22 = scalar_lea.sflag [#allocation4], %s647_s30 }
 0x280   : > { %p815_p5 = pnand %p1343_p0, %p1342_p8 }
 0x282   : > { %981 = dma.done.wait (!%p815_p5), %s648_s22, 384  }
 0x283   : > { %983 = vsyncadd (!%p815_p5), %s648_s22, 4294966912  ;;  %p20_p10 = scmp.ge.s32.totalorder %s1093_s29, 4   ;;  %s1344_s18 = smov %s990_s19 }
 0x284   : > { %s1345_s19 = smov %s994_s20  ;;  %s1346_s20 = smov %s1129_s27 }
 0x285   : > { %s1347_s21 = smov %s1093_s29  ;;  %22 = sbr.rel (!%p20_p10) target bundleno = 6 (0x6), region = 105 }
 0x28c   :  { %667 = vsyncpa [#allocation3], 1 }
 0x28d   :  { %669 = vsyncpa [#allocation3 + $0x1], 1 }
 0x28e   :  { %670 = vsyncpa [#allocation6], 1 }
 0x28f   :  { %671 = vsyncpa [#allocation4], 1 }
 0x290   :  { %673 = vsyncpa [#allocation4 + $0x1], 1 }

</bundles_post_ra>
